<compile_context>
chip_gen: v5e
topology: v5e:2x2
jax: 0.10.0
libtpu: 0.0.40
codegen_flags: <defaults>
</compile_context>

<pallas_src>
import jax
import jax.numpy as jnp
from jax.experimental import pallas as pl
from jax.experimental.pallas import tpu as pltpu


def _proj_kernel(x_ref, w_ref, b_ref, o_ref):
    # (TM, C) @ (C, N) on the MXU with f32 accumulation, add bias, cast to output dtype.
    acc = jnp.dot(x_ref[...], w_ref[...], preferred_element_type=jnp.float32)
    o_ref[...] = (acc + b_ref[...]).astype(o_ref.dtype)


def rebuild_image_forward(x, weight, bias, patch_size, *, tile_m=512):
    """Equivalent of RebuildImage.forward for mode='2d', norm=None.

    Args:
      x:      (B, H, W, C)  channels-last feature map (C == embed_dim), bf16 or f32.
      weight: (C, in_chans, p, p)  -- PyTorch ConvTranspose2d weight layout.
      bias:   (in_chans,)
      tile_m: rows of the flat matmul processed per grid step (multiple of 8).
    Returns:
      (B, in_chans, H*p, W*p)  -- NCHW, matching PyTorch output, dtype == x.dtype.
    """
    B, H, W, C = x.shape
    in_chans = weight.shape[1]
    p = patch_size
    N = in_chans * p * p
    M = B * H * W

    compute_dtype = x.dtype
    # No f32 up-cast: the op is HBM-bandwidth bound, so keeping activations/weights in the
    # model dtype (bf16) halves the dominant traffic.  Accumulation stays f32 on the MXU.
    x2 = x.reshape(M, C)
    # Flat (oc, ph, pw) ordering matches ConvTranspose2d semantics:
    # out[b, oc, i*p+ph, j*p+pw] = sum_c x[b,i,j,c] * W[c, oc, ph, pw] + bias[oc]
    w2 = weight.reshape(C, N).astype(compute_dtype)                       # VMEM-resident
    b2 = jnp.repeat(bias.astype(jnp.float32), p * p).reshape(1, N)        # VMEM-resident, f32

    tm = min(tile_m, M)                 # tm == M (full dim) for tiny inputs, else a multiple of 8
    grid = (pl.cdiv(M, tm),)            # remainder block handled by Pallas masking

    out_flat = pl.pallas_call(
        _proj_kernel,
        out_shape=jax.ShapeDtypeStruct((M, N), compute_dtype),
        grid_spec=pl.GridSpec(
            grid=grid,
            in_specs=[
                pl.BlockSpec((tm, C), lambda i: (i, 0)),   # activations: streamed / pipelined
                pl.BlockSpec((C, N), lambda i: (0, 0)),    # weight: fetched once, stays resident
                pl.BlockSpec((1, N), lambda i: (0, 0)),    # bias: fetched once, stays resident
            ],
            out_specs=pl.BlockSpec((tm, N), lambda i: (i, 0)),
        ),
        compiler_params=pltpu.CompilerParams(
            # Independent M tiles: shard the grid across both TensorCores on v7x.
            dimension_semantics=("parallel",),
        ),
    )(x2, w2, b2)

    # (B*H*W, in_chans*p*p) -> (B, H, W, in_chans, p, p) -> NCHW.  Done in the compute dtype
    # (bf16) so this extra XLA pass moves half the bytes of the previous f32 version.
    # TODO(synk): fold this rearrange into the kernel's output index_map (grid over
    # (batch, row-group) writing contiguous (in_chans, rows*p, W*p) slabs) to save one full HBM
    # round trip; skipped here because the required in-kernel 5-D relayout with p < 8 sublanes
    # is fragile to lower on Mosaic.
    out = out_flat.reshape(B, H, W, in_chans, p, p)
    out = out.transpose(0, 3, 1, 4, 2, 5).reshape(B, in_chans, H * p, W * p)
    return out


if __name__ == "__main__":
    # Small, deterministic example consistent with the module:
    # embed_dim=32, in_chans=3, patch_size=4, feature map 8x8, batch 2.
    B, H, W = 2, 8, 8
    embed_dim, in_chans, patch_size = 32, 3, 4

    key = jax.random.PRNGKey(0)
    kx, kw, kb = jax.random.split(key, 3)
    x = jax.random.normal(kx, (B, H, W, embed_dim), dtype=jnp.float32).astype(jnp.bfloat16)
    # ConvTranspose2d weight shape: (in_channels=embed_dim, out_channels=in_chans, p, p)
    weight = (
        jax.random.normal(kw, (embed_dim, in_chans, patch_size, patch_size), dtype=jnp.float32)
        * 0.02
    ).astype(jnp.bfloat16)
    bias = jax.random.normal(kb, (in_chans,), dtype=jnp.float32) * 0.02

    # tile_m=64 so even this tiny demo exercises a multi-step (pipelined, weight-resident) grid.
    out = rebuild_image_forward(x, weight, bias, patch_size, tile_m=64)
    out = jax.block_until_ready(out)
    assert out.shape == (B, in_chans, H * patch_size, W * patch_size)
    assert out.dtype == jnp.bfloat16

    # Plain-JAX f32 reference of the same (non-overlapping) transposed conv, from the same
    # bf16-quantized inputs.
    xf = x.astype(jnp.float32)
    wf = weight.astype(jnp.float32)
    ref_flat = xf.reshape(-1, embed_dim) @ wf.reshape(embed_dim, -1) + jnp.repeat(
        bias, patch_size * patch_size
    )
    ref = (
        ref_flat.reshape(B, H, W, in_chans, patch_size, patch_size)
        .transpose(0, 3, 1, 4, 2, 5)
        .reshape(B, in_chans, H * patch_size, W * patch_size)
    )
    assert jnp.allclose(out.astype(jnp.float32), ref, atol=1e-2, rtol=1e-2)

    print("KERNEL_OK")
</pallas_src>

<mosaic_0001>
module attributes {stable_mosaic.version = 11 : i64} {
  func.func @_proj_kernel(%arg0: i32, %arg1: memref<64x32xbf16, #tpu.memory_space<vmem>>, %arg2: memref<32x48xbf16, #tpu.memory_space<vmem>>, %arg3: memref<1x48xf32, #tpu.memory_space<vmem>>, %arg4: memref<64x48xbf16, #tpu.memory_space<vmem>>) attributes {dimension_semantics = [#tpu.dimension_semantics<parallel>], iteration_bounds = array<i64: 2>, scalar_prefetch = 0 : i64, scratch_operands = 0 : i64, tpu.core_type = #tpu.core_type<tc>, window_params = [{transform_indices = @transform_0, window_bounds = array<i64: 64, 32>}, {pipeline_mode = #tpu.pipeline_mode<synchronous>, transform_indices = @transform_1, window_bounds = array<i64: 32, 48>}, {pipeline_mode = #tpu.pipeline_mode<synchronous>, transform_indices = @transform_2, window_bounds = array<i64: 1, 48>}, {transform_indices = @transform_3, window_bounds = array<i64: 64, 48>}]} {
    %c0 = arith.constant 0 : index
    %c0_0 = arith.constant 0 : index
    %0 = vector.load %arg1[%c0, %c0_0] : memref<64x32xbf16, #tpu.memory_space<vmem>>, vector<64x32xbf16>
    %c0_1 = arith.constant 0 : index
    %c0_2 = arith.constant 0 : index
    %1 = vector.load %arg2[%c0_1, %c0_2] : memref<32x48xbf16, #tpu.memory_space<vmem>>, vector<32x48xbf16>
    %cst = arith.constant dense<0.000000e+00> : vector<64x48xf32>
    %2 = tpu.matmul %0, %1, %cst {dimension_numbers = #tpu.dot_dimension_numbers<[1], [0], [0], [1], [0, 0, 1, 1], [], []>} : vector<64x32xbf16>, vector<32x48xbf16>, vector<64x48xf32> -> vector<64x48xf32>
    %c0_3 = arith.constant 0 : index
    %c0_4 = arith.constant 0 : index
    %3 = vector.load %arg3[%c0_3, %c0_4] : memref<1x48xf32, #tpu.memory_space<vmem>>, vector<1x48xf32>
    %4 = vector.broadcast %3 : vector<1x48xf32> to vector<64x48xf32>
    %5 = arith.addf %2, %4 : vector<64x48xf32>
    %6 = arith.truncf %5 : vector<64x48xf32> to vector<64x48xbf16>
    %c0_5 = arith.constant 0 : index
    %c0_6 = arith.constant 0 : index
    %7 = vector.load %arg4[%c0_5, %c0_6] : memref<64x48xbf16, #tpu.memory_space<vmem>>, vector<64x48xbf16>
    tpu.vector_store %arg4[%c0_5, %c0_6], %6 {strides = array<i32>} : memref<64x48xbf16, #tpu.memory_space<vmem>>, vector<64x48xbf16>,
    return
  }
  func.func @transform_0(%arg0: i32) -> (i32, i32) {
    %c0_i32 = arith.constant 0 : i32
    %c0_i32_0 = arith.constant 0 : i32
    return %arg0, %c0_i32 : i32, i32
  }
  func.func @transform_1(%arg0: i32) -> (i32, i32) {
    %c0_i32 = arith.constant 0 : i32
    %c0_i32_0 = arith.constant 0 : i32
    %c0_i32_1 = arith.constant 0 : i32
    return %c0_i32, %c0_i32_0 : i32, i32
  }
  func.func @transform_2(%arg0: i32) -> (i32, i32) {
    %c0_i32 = arith.constant 0 : i32
    %c0_i32_0 = arith.constant 0 : i32
    %c0_i32_1 = arith.constant 0 : i32
    return %c0_i32, %c0_i32_0 : i32, i32
  }
  func.func @transform_3(%arg0: i32) -> (i32, i32) {
    %c0_i32 = arith.constant 0 : i32
    %c0_i32_0 = arith.constant 0 : i32
    return %arg0, %c0_i32 : i32, i32
  }
}

</mosaic_0001>

<bundles_post_ra>
// kernel: tpu_custom_call.1
= control target key start
LH: loop header
LB: loop body
LE: loop exit
PB: predicated region body
PF: predicated region fallthrough
CT: control target
= control target key end

     0   :  { %s426_s12 = smov 0   ;;  %s460_s0 = inlined_call_operand.vmem [shape: bf16[128,32], index: 0, kind: input, shape index: {}]   ;;  %s461_s1 = inlined_call_operand.vmem [shape: bf16[32,48], index: 1, kind: input, shape index: {}]   ;;  %s462_s2 = inlined_call_operand.vmem [shape: f32[1,48], index: 2, kind: input, shape index: {}]   ;;  %s463_s3 = inlined_call_operand.vmem [shape: bf16[128,48], index: 3, kind: output, shape index: {}]  }
   0x1 LB: > { %s338_s13 = sadd.s32 4294967295, %s404_s12   ;;  %p342_p0 = scmp.ge.s32.totalorder %s404_s12, 1  ;;  %s404_s12 = sphi %s426_s12, %s13_s12  }
   0x2   : > { %p138_p1 = scmp.lt.s32.totalorder %s404_s12, 3 }
   0x4   : > { %p139_p2 = pnand %p342_p0, %p138_p1 }
   0x5   : > { %s343_s16 = sshll.u32 (!%p139_p2), %s338_s13, 3 }
   0x6   : > { %142 = sbr.rel (%p139_p2) target bundleno = 166 (0xa6), region = 32  ;;  %p163_p3 = scmp.lt.s32.totalorder (!%p139_p2), %s343_s16, 15 }
   0xb   : > { %v382_v0 = vld [vmem:[%s461_s1 + $0x8] sm:$0xff]  ;;  %v381_v1 = vld [vmem:[%s461_s1] sm:$0xff]  ;;  %s465_s16 = smov (!%p163_p3, %s343_s16), 15  ;;  %vm223_vm0 = vcmask 261120   ;;  %vm273_vm1 = vcmask 388096  }
   0xc   : > { %242 = vmatpush.bf16.msra.mxu0 %v382_v0  ;;  %383 = vmatpush.bf16.msra.mxu1 %v382_v0  ;;  %s344_s19 = sshll.u32 %s465_s16, 2  ;;  %v397_v6 = vld [vmem:[%s462_s2] ss:$0 sm:$0xff] }
   0xd   : > { %384 = vmatpush.bf16.msra.mxu2 %v382_v0  ;;  %385 = vmatpush.bf16.msra.mxu3 %v382_v0  ;;  %s166_s22 = scalar_lea.vmem %s460_s0, %s344_s19  ;;  %s172_s27 = scalar_lea.vmem %s463_s3, %s344_s19 }
   0xe   : > { %v377_v2 = vld [vmem:[%s166_s22] sm:$0xff]  ;;  %v378_v3 = vld [vmem:[%s166_s22 + $0x8] sm:$0xff]  ;;  %v379_v4 = vld [vmem:[%s166_s22 + $0x10] sm:$0xff] }
   0xf   : > { %v380_v5 = vld [vmem:[%s166_s22 + $0x18] sm:$0xff] }
  0x10   : > { %243 = vmatpush.bf16.msra.mxu0 %v381_v1  ;;  %386 = vmatpush.bf16.msra.mxu1 %v381_v1 }
  0x11   : > { %387 = vmatpush.bf16.msra.mxu2 %v381_v1  ;;  %388 = vmatpush.bf16.msra.mxu3 %v381_v1 }
  0x13   : > { %371 = vmatmul.msk.bf16.vlgmr.msra.gmra.mxu0 %vm223_vm0, %v377_v2  ;;  %372 = vmatmul.msk.bf16.vlgmr.msra.gmra.mxu1 %vm223_vm0, %v378_v3 }
  0x14   : > { %373 = vmatmul.msk.bf16.vlgmr.msra.gmra.mxu2 %vm223_vm0, %v379_v4  ;;  %374 = vmatmul.msk.bf16.vlgmr.msra.gmra.mxu3 %vm223_vm0, %v380_v5 }
  0x90   : > { %v245_v7 = vpop.f32.mrf.mxu0  ;;  %v250_v8 = vpop.f32.mrf.mxu1 }
  0x91   : > { %v246_v9 = vadd.f32 %v397_v6, %v245_v7  ;;  %v251_v10 = vadd.f32 %v397_v6, %v250_v8 }
  0x93   : > { %v265_v11 = vpack.c.bf16 %v246_v9, %v246_v9  ;;  %v267_v12 = vpack.c.bf16 %v251_v10, %v251_v10 }
  0x95   : > { %274 = vst.msk [vmem:[%s172_s27] sm:$0xf] %vm273_vm1, %v265_v11 }
  0x96   : > { %276 = vst.msk [vmem:[%s172_s27 + $0x8] sm:$0xf] %vm273_vm1, %v267_v12 }
  0x97   : > { %v255_v13 = vpop.f32.mrf.mxu2  ;;  %v260_v14 = vpop.f32.mrf.mxu3 }
  0x98   : > { %v256_v15 = vadd.f32 %v397_v6, %v255_v13  ;;  %v261_v16 = vadd.f32 %v397_v6, %v260_v14  ;;  %v247_v17 = vpop.f32.mrf.mxu0  ;;  %v252_v18 = vpop.f32.mrf.mxu1 }
  0x99   : > { %v248_v19 = vadd.f32 %v397_v6, %v247_v17  ;;  %v253_v20 = vadd.f32 %v397_v6, %v252_v18 }
  0x9a   : > { %v269_v21 = vpack.c.bf16 %v256_v15, %v256_v15  ;;  %v271_v22 = vpack.c.bf16 %v261_v16, %v261_v16 }
  0x9b   : > { %v266_v23 = vpack.c.bf16 %v248_v19, %v248_v19  ;;  %v268_v24 = vpack.c.bf16 %v253_v20, %v253_v20 }
  0x9c   : > { %278 = vst.msk [vmem:[%s172_s27 + $0x10] sm:$0xf] %vm273_vm1, %v269_v21 }
  0x9d   : > { %280 = vst.msk [vmem:[%s172_s27 + $0x18] sm:$0xf] %vm273_vm1, %v271_v22 }
  0x9e   : > { %275 = vst.msk [vmem:[%s172_s27 + $0x4] sm:$0xf] %vm273_vm1, %v266_v23 }
  0x9f   : > { %277 = vst.msk [vmem:[%s172_s27 + $0xc] sm:$0xf] %vm273_vm1, %v268_v24  ;;  %v257_v25 = vpop.f32.mrf.mxu2  ;;  %v262_v26 = vpop.f32.mrf.mxu3 }
  0xa0   : > { %v258_v27 = vadd.f32 %v397_v6, %v257_v25  ;;  %v263_v28 = vadd.f32 %v397_v6, %v262_v26 }
  0xa2   : > { %v270_v29 = vpack.c.bf16 %v258_v27, %v258_v27  ;;  %v272_v30 = vpack.c.bf16 %v263_v28, %v263_v28 }
  0xa4   : > { %279 = vst.msk [vmem:[%s172_s27 + $0x14] sm:$0xf] %vm273_vm1, %v270_v29 }
  0xa5   : > { %281 = vst.msk [vmem:[%s172_s27 + $0x1c] sm:$0xf] %vm273_vm1, %v272_v30 }
  0xa6 PF: > { %s13_s12 = sadd.s32 1, %s404_s12  }
  0xa7   : > { %p10_p4 = scmp.ge.s32.totalorder %s13_s12, 4  }
  0xa9   :  { %12 = sbr.rel (!%p10_p4) target bundleno = 1 (0x1), region = 62 }

</bundles_post_ra>
